<compile_context>
chip_gen: v7x
topology: tpu7x:2x2x1
jax: 0.10.0
libtpu: 0.0.40
codegen_flags: <defaults>
</compile_context>

<pallas_src>
import jax
import jax.numpy as jnp
from jax.experimental import pallas as pl
from jax.experimental.pallas import tpu as pltpu

# ---- model / packing constants ------------------------------------------------
STATE_F = 2
ACT_F = 3
IN_F = STATE_F + ACT_F   # 5
HID = 64
OUT_F = 2
OUT_PAD = 8              # output lanes actually written back to HBM
LANES = 128              # in-kernel compute stays 128-lane dense

W1_R0 = 0                # rows   0:5    -> W1 [5,64]   at [0:5,    0:64]
W2_R0 = 8                # rows   8:136  -> W2 [64,64]  at [8:72,   0:64] (zero-padded 128x128)
W3_R0 = 136              # rows 136:264  -> W3 [64,2]   at [136:200, 0:2] (zero-padded 128x128)
B_R0 = 264               # row 264 = b1, 265 = b2, 266 = b3 (each zero-padded to 128 lanes)
PACK_ROWS = 272          # multiple of 8 -> every slice below is (8,128)-tile aligned


def predictor_kernel(s_ref, a_ref, wp_ref, out_ref):
    """s_ref:[tb,2]  a_ref:[tb,3]  wp_ref:[272,128] (resident)  out_ref:[tb,8]."""
    tb = s_ref.shape[0]

    # --- lin1 + relu on the VPU: K=5 contraction as 5 broadcast mul-adds -------
    acc = jnp.broadcast_to(wp_ref[B_R0:B_R0 + 1, :], (tb, LANES))          # b1 (hoisted)
    for k in range(STATE_F):                                               # static unroll
        acc = acc + s_ref[:, k:k + 1] * wp_ref[W1_R0 + k:W1_R0 + k + 1, :]
    for k in range(ACT_F):
        r = W1_R0 + STATE_F + k
        acc = acc + a_ref[:, k:k + 1] * wp_ref[r:r + 1, :]
    h1 = jnp.maximum(acc, 0.0)                 # [tb,128]; lanes 64: stay exactly 0

    # --- lin2 + relu on the MXU (zero-padded 128x128 weight) --------------------
    h2 = jnp.dot(h1, wp_ref[W2_R0:W2_R0 + LANES, :],
                 preferred_element_type=jnp.float32) + wp_ref[B_R0 + 1:B_R0 + 2, :]
    h2 = jnp.maximum(h2, 0.0)

    # --- lin3 on the MXU; compute stays lane-dense, only 8 lanes hit HBM --------
    y = (jnp.dot(h2, wp_ref[W3_R0:W3_R0 + LANES, :],
                 preferred_element_type=jnp.float32)
         + wp_ref[B_R0 + 2:B_R0 + 3, :])
    out_ref[...] = y[:, :OUT_PAD]


def pack_params(p):
    """Pack transposed weights ([in,out]) and biases into one [272,128] array.

    NOTE: all padded regions MUST remain zero (W2/W3 rows 72:136 / 200:264,
    bias lanes 64:127, W3 cols 2:128).  Garbage there would leak straight into
    the real output columns 0:2 — never donate/reuse this buffer.
    """
    wp = jnp.zeros((PACK_ROWS, LANES), jnp.float32)
    wp = wp.at[W1_R0:W1_R0 + IN_F, 0:HID].set(p["w1"])
    wp = wp.at[W2_R0:W2_R0 + HID, 0:HID].set(p["w2"])
    wp = wp.at[W3_R0:W3_R0 + HID, 0:OUT_F].set(p["w3"])
    wp = wp.at[B_R0, 0:HID].set(p["b1"])
    wp = wp.at[B_R0 + 1, 0:HID].set(p["b2"])
    wp = wp.at[B_R0 + 2, 0:OUT_F].set(p["b3"])
    return wp


def model_forward(state, action, wp, *, max_tile=2048):
    """state: [B,2], action: [B,3] (float one-hot), wp: packed [272,128] params."""
    B = state.shape[0]
    state = state.astype(jnp.float32)
    action = action.astype(jnp.float32)

    tb = min(max_tile, pl.cdiv(B, 8) * 8)      # batch-tile rows (multiple of 8)
    Bp = pl.cdiv(B, tb) * tb                   # padded batch (multiple of tb)
    if Bp != B:
        state = jnp.zeros((Bp, STATE_F), jnp.float32).at[:B].set(state)
        action = jnp.zeros((Bp, ACT_F), jnp.float32).at[:B].set(action)

    cost = pl.CostEstimate(
        flops=2 * Bp * (IN_F * HID + HID * HID + HID * OUT_F),
        transcendentals=0,
        bytes_accessed=4 * (Bp * (STATE_F + ACT_F + OUT_PAD) + PACK_ROWS * LANES),
    )
    out = pl.pallas_call(
        predictor_kernel,
        out_shape=jax.ShapeDtypeStruct((Bp, OUT_PAD), jnp.float32),
        grid=(Bp // tb,),
        in_specs=[
            pl.BlockSpec((tb, STATE_F), lambda i: (i, 0)),
            pl.BlockSpec((tb, ACT_F), lambda i: (i, 0)),
            pl.BlockSpec((PACK_ROWS, LANES), lambda i: (0, 0)),   # weights resident
        ],
        out_specs=pl.BlockSpec((tb, OUT_PAD), lambda i: (i, 0)),
        compiler_params=pltpu.CompilerParams(dimension_semantics=("parallel",)),
        cost_estimate=cost,
    )(state, action, wp)
    return out[:B, :OUT_F]


def init_params(key):
    """nn.Linear-style uniform init; weights stored transposed as [in, out]."""
    ks = jax.random.split(key, 6)

    def lin(kw, kb, fan_in, fan_out):
        bound = 1.0 / jnp.sqrt(jnp.float32(fan_in))
        w = jax.random.uniform(kw, (fan_in, fan_out), jnp.float32, -bound, bound)
        b = jax.random.uniform(kb, (fan_out,), jnp.float32, -bound, bound)
        return w, b

    w1, b1 = lin(ks[0], ks[1], IN_F, HID)
    w2, b2 = lin(ks[2], ks[3], HID, HID)
    w3, b3 = lin(ks[4], ks[5], HID, OUT_F)
    return {"w1": w1, "b1": b1, "w2": w2, "b2": b2, "w3": w3, "b3": b3}


def reference_forward(state, action, p):
    """Pure-JAX reference for correctness."""
    x = jnp.concatenate([state, action], axis=-1)
    h1 = jnp.maximum(x @ p["w1"] + p["b1"], 0.0)
    h2 = jnp.maximum(h1 @ p["w2"] + p["b2"], 0.0)
    return h2 @ p["w3"] + p["b3"]


if __name__ == "__main__":
    key = jax.random.PRNGKey(0)
    k_s, k_a, k_p, k_s2, k_a2 = jax.random.split(key, 5)

    params = init_params(k_p)
    wp = pack_params(params)

    # -- primary small-shape test (single grid step) -----------------------------
    B = 8
    state = jax.random.normal(k_s, (B, STATE_F), jnp.float32)
    action = jax.nn.one_hot(jax.random.randint(k_a, (B,), 0, ACT_F), ACT_F,
                            dtype=jnp.float32)
    out = jax.block_until_ready(model_forward(state, action, wp))
    ref = reference_forward(state, action, params)
    assert out.shape == (B, OUT_F), out.shape
    assert jnp.allclose(out, ref, atol=1e-5, rtol=1e-5), "mismatch vs JAX ref (B=8)"

    # -- ragged batch through the multi-tile pipelined grid (small tile for test) -
    B2 = 200
    state2 = jax.random.normal(k_s2, (B2, STATE_F), jnp.float32)
    action2 = jax.nn.one_hot(jax.random.randint(k_a2, (B2,), 0, ACT_F), ACT_F,
                             dtype=jnp.float32)
    out2 = jax.block_until_ready(model_forward(state2, action2, wp, max_tile=64))
    ref2 = reference_forward(state2, action2, params)
    assert out2.shape == (B2, OUT_F), out2.shape
    assert jnp.allclose(out2, ref2, atol=1e-5, rtol=1e-5), "mismatch vs JAX ref (B=200)"

    print("KERNEL_OK")
</pallas_src>

<mosaic_0001>
module attributes {stable_mosaic.version = 11 : i64} {
  func.func @predictor_kernel(%arg0: i32, %arg1: memref<8x2xf32, #tpu.memory_space<vmem>>, %arg2: memref<8x3xf32, #tpu.memory_space<vmem>>, %arg3: memref<272x128xf32, #tpu.memory_space<vmem>>, %arg4: memref<8x8xf32, #tpu.memory_space<vmem>>) attributes {dimension_semantics = [#tpu.dimension_semantics<parallel>], iteration_bounds = array<i64: 1>, scalar_prefetch = 0 : i64, scratch_operands = 0 : i64, tpu.core_type = #tpu.core_type<tc>, window_params = [{transform_indices = @transform_0, window_bounds = array<i64: 8, 2>}, {transform_indices = @transform_1, window_bounds = array<i64: 8, 3>}, {pipeline_mode = #tpu.pipeline_mode<synchronous>, transform_indices = @transform_2, window_bounds = array<i64: 272, 128>}, {transform_indices = @transform_3, window_bounds = array<i64: 8, 8>}]} {
    %c264 = arith.constant 264 : index
    %c0 = arith.constant 0 : index
    %0 = vector.load %arg3[%c264, %c0] : memref<272x128xf32, #tpu.memory_space<vmem>>, vector<1x128xf32>
    %1 = vector.shape_cast %0 : vector<1x128xf32> to vector<1x128xf32>
    %2 = vector.broadcast %1 : vector<1x128xf32> to vector<8x128xf32>
    %c0_0 = arith.constant 0 : index
    %c0_1 = arith.constant 0 : index
    %3 = vector.load %arg1[%c0_0, %c0_1] : memref<8x2xf32, #tpu.memory_space<vmem>>, vector<8x1xf32>
    %c0_2 = arith.constant 0 : index
    %c0_3 = arith.constant 0 : index
    %4 = vector.load %arg3[%c0_2, %c0_3] : memref<272x128xf32, #tpu.memory_space<vmem>>, vector<1x128xf32>
    %5 = vector.broadcast %3 : vector<8x1xf32> to vector<8x128xf32>
    %6 = vector.broadcast %4 : vector<1x128xf32> to vector<8x128xf32>
    %7 = arith.mulf %5, %6 : vector<8x128xf32>
    %8 = arith.addf %2, %7 : vector<8x128xf32>
    %c0_4 = arith.constant 0 : index
    %c1 = arith.constant 1 : index
    %9 = vector.load %arg1[%c0_4, %c1] : memref<8x2xf32, #tpu.memory_space<vmem>>, vector<8x1xf32>
    %c1_5 = arith.constant 1 : index
    %c0_6 = arith.constant 0 : index
    %10 = vector.load %arg3[%c1_5, %c0_6] : memref<272x128xf32, #tpu.memory_space<vmem>>, vector<1x128xf32>
    %11 = vector.broadcast %9 : vector<8x1xf32> to vector<8x128xf32>
    %12 = vector.broadcast %10 : vector<1x128xf32> to vector<8x128xf32>
    %13 = arith.mulf %11, %12 : vector<8x128xf32>
    %14 = arith.addf %8, %13 : vector<8x128xf32>
    %c0_7 = arith.constant 0 : index
    %c0_8 = arith.constant 0 : index
    %15 = vector.load %arg2[%c0_7, %c0_8] : memref<8x3xf32, #tpu.memory_space<vmem>>, vector<8x1xf32>
    %c2 = arith.constant 2 : index
    %c0_9 = arith.constant 0 : index
    %16 = vector.load %arg3[%c2, %c0_9] : memref<272x128xf32, #tpu.memory_space<vmem>>, vector<1x128xf32>
    %17 = vector.broadcast %15 : vector<8x1xf32> to vector<8x128xf32>
    %18 = vector.broadcast %16 : vector<1x128xf32> to vector<8x128xf32>
    %19 = arith.mulf %17, %18 : vector<8x128xf32>
    %20 = arith.addf %14, %19 : vector<8x128xf32>
    %c0_10 = arith.constant 0 : index
    %c1_11 = arith.constant 1 : index
    %21 = vector.load %arg2[%c0_10, %c1_11] : memref<8x3xf32, #tpu.memory_space<vmem>>, vector<8x1xf32>
    %c3 = arith.constant 3 : index
    %c0_12 = arith.constant 0 : index
    %22 = vector.load %arg3[%c3, %c0_12] : memref<272x128xf32, #tpu.memory_space<vmem>>, vector<1x128xf32>
    %23 = vector.broadcast %21 : vector<8x1xf32> to vector<8x128xf32>
    %24 = vector.broadcast %22 : vector<1x128xf32> to vector<8x128xf32>
    %25 = arith.mulf %23, %24 : vector<8x128xf32>
    %26 = arith.addf %20, %25 : vector<8x128xf32>
    %c0_13 = arith.constant 0 : index
    %c2_14 = arith.constant 2 : index
    %27 = vector.load %arg2[%c0_13, %c2_14] : memref<8x3xf32, #tpu.memory_space<vmem>>, vector<8x1xf32>
    %c4 = arith.constant 4 : index
    %c0_15 = arith.constant 0 : index
    %28 = vector.load %arg3[%c4, %c0_15] : memref<272x128xf32, #tpu.memory_space<vmem>>, vector<1x128xf32>
    %29 = vector.broadcast %27 : vector<8x1xf32> to vector<8x128xf32>
    %30 = vector.broadcast %28 : vector<1x128xf32> to vector<8x128xf32>
    %31 = arith.mulf %29, %30 : vector<8x128xf32>
    %32 = arith.addf %26, %31 : vector<8x128xf32>
    %cst = arith.constant 0.000000e+00 : f32
    %33 = vector.broadcast %cst : f32 to vector<8x128xf32>
    %34 = arith.maximumf %32, %33 : vector<8x128xf32>
    %c8 = arith.constant 8 : index
    %c0_16 = arith.constant 0 : index
    %35 = vector.load %arg3[%c8, %c0_16] : memref<272x128xf32, #tpu.memory_space<vmem>>, vector<128x128xf32>
    %cst_17 = arith.constant dense<0.000000e+00> : vector<8x128xf32>
    %36 = tpu.matmul %34, %35, %cst_17 {dimension_numbers = #tpu.dot_dimension_numbers<[1], [0], [0], [1], [0, 0, 1, 1], [], []>} : vector<8x128xf32>, vector<128x128xf32>, vector<8x128xf32> -> vector<8x128xf32>
    %c265 = arith.constant 265 : index
    %c0_18 = arith.constant 0 : index
    %37 = vector.load %arg3[%c265, %c0_18] : memref<272x128xf32, #tpu.memory_space<vmem>>, vector<1x128xf32>
    %38 = vector.broadcast %37 : vector<1x128xf32> to vector<8x128xf32>
    %39 = arith.addf %36, %38 : vector<8x128xf32>
    %cst_19 = arith.constant 0.000000e+00 : f32
    %40 = vector.broadcast %cst_19 : f32 to vector<8x128xf32>
    %41 = arith.maximumf %39, %40 : vector<8x128xf32>
    %c136 = arith.constant 136 : index
    %c0_20 = arith.constant 0 : index
    %42 = vector.load %arg3[%c136, %c0_20] : memref<272x128xf32, #tpu.memory_space<vmem>>, vector<128x128xf32>
    %cst_21 = arith.constant dense<0.000000e+00> : vector<8x128xf32>
    %43 = tpu.matmul %41, %42, %cst_21 {dimension_numbers = #tpu.dot_dimension_numbers<[1], [0], [0], [1], [0, 0, 1, 1], [], []>} : vector<8x128xf32>, vector<128x128xf32>, vector<8x128xf32> -> vector<8x128xf32>
    %c266 = arith.constant 266 : index
    %c0_22 = arith.constant 0 : index
    %44 = vector.load %arg3[%c266, %c0_22] : memref<272x128xf32, #tpu.memory_space<vmem>>, vector<1x128xf32>
    %45 = vector.broadcast %44 : vector<1x128xf32> to vector<8x128xf32>
    %46 = arith.addf %43, %45 : vector<8x128xf32>
    %47 = vector.extract_strided_slice %46 {offsets = [0, 0], sizes = [8, 8], strides = [1, 1]} : vector<8x128xf32> to vector<8x8xf32>
    %c0_23 = arith.constant 0 : index
    %c0_24 = arith.constant 0 : index
    %48 = vector.load %arg4[%c0_23, %c0_24] : memref<8x8xf32, #tpu.memory_space<vmem>>, vector<8x8xf32>
    tpu.vector_store %arg4[%c0_23, %c0_24], %47 {strides = array<i32>} : memref<8x8xf32, #tpu.memory_space<vmem>>, vector<8x8xf32>,
    return
  }
  func.func @transform_0(%arg0: i32) -> (i32, i32) {
    %c0_i32 = arith.constant 0 : i32
    %c0_i32_0 = arith.constant 0 : i32
    return %arg0, %c0_i32 : i32, i32
  }
  func.func @transform_1(%arg0: i32) -> (i32, i32) {
    %c0_i32 = arith.constant 0 : i32
    %c0_i32_0 = arith.constant 0 : i32
    return %arg0, %c0_i32 : i32, i32
  }
  func.func @transform_2(%arg0: i32) -> (i32, i32) {
    %c0_i32 = arith.constant 0 : i32
    %c0_i32_0 = arith.constant 0 : i32
    %c0_i32_1 = arith.constant 0 : i32
    return %c0_i32, %c0_i32_0 : i32, i32
  }
  func.func @transform_3(%arg0: i32) -> (i32, i32) {
    %c0_i32 = arith.constant 0 : i32
    %c0_i32_0 = arith.constant 0 : i32
    return %arg0, %c0_i32 : i32, i32
  }
}

</mosaic_0001>

<bundles_post_ra>
// kernel: tpu_custom_call.1
= control target key start
LH: loop header
LB: loop body
LE: loop exit
PB: predicated region body
PF: predicated region fallthrough
CT: control target
= control target key end

     0   :  { %8 = vsyncpa [#allocation3], 0  ;;  %s594_s0 = inlined_call_operand.vmem [shape: f32[8,2], index: 0, kind: input, shape index: {}]   ;;  %s595_s1 = inlined_call_operand.vmem [shape: f32[8,3], index: 1, kind: input, shape index: {}]   ;;  %s596_s2 = inlined_call_operand.hbm [shape: f32[272,128], index: 2, kind: input, shape index: {}]   ;;  %s597_s3 = inlined_call_operand.hbm [shape: f32[8,8], index: 3, kind: output, shape index: {}]  }
   0x1   :  { %9 = vsyncpa [#allocation4], 0  ;;  %s518_s12 = smov [#allocation2]   ;;  %s470_s16 = scalar_lea.hbm %s596_s2, 4352 }
   0x2   :  { %s19_s13 = sshll.u32 %s518_s12, 4  ;;  %p471_p0 = scmp.ne.s32.totalorder %s596_s2, %s470_s16  ;;  %s20_s13 = int_to_ptr.vmem [resolvable:$true] %s19_s13 }
   0x3   :  { %p474_p1 = scmp.lt.u32.totalorder %s470_s16, %s596_s2 }
   0x5   :  { %p476_p2 = pnand %p474_p1, %p471_p0 }
   0x7   :  { %479 = shalt.err (!%p476_p2)
}
   0x8   :  { %s480_s21 = scalar_lea.vmem %s20_s13, 4352  ;;  %p485_p4 = scmp.lt.s32.totalorder %s20_s13, %s20_s13 }
   0x9   :  { %p481_p3 = scmp.ne.s32.totalorder %s20_s13, %s480_s21  ;;  %p486_p5 = scmp.lt.s32.totalorder %s480_s21, %s480_s21 }
   0xb   :  { %p487_p6 = por %p486_p5, %p485_p4 }
   0xd   :  { %p488_p7 = pnand %p487_p6, %p481_p3 }
   0xf   :  { %491 = shalt.err (!%p488_p7)
}
  0x10   :  { %s519_s22 = smov 128   ;;  %s520_s23 = smov 8  }
  0x11   :  { %25 = dma.hbm_to_vmem [thread:$0]  %s596_s2, 4352, %s20_s13, [#allocation3], %s519_s22, %s519_s22, %s520_s23  }
  0x12   :  { %514 = dma.done.wait [#allocation3], 4352  }
  0x13   :  { %515 = vsyncadd [#allocation3], 4294962944  ;;  %v521_v0 = vmov 0   ;;  %v522_v1 = vmov 0.0|0.0   ;;  %v34_v2 = vld [vmem:[%s594_s0] sm:$0xff]  ;;  %v94_v4 = vld [vmem:[#allocation2 + $0x8] sm:$0xff] }
  0x14   :  { %464 = vset.pattern.permute.xlu0 %v521_v0  ;;  %466 = vset.pattern.permute.xlu1 %v521_v0  ;;  %v58_v3 = vld [vmem:[%s595_s1] sm:$0xff]  ;;  %v95_v5 = vld [vmem:[#allocation2 + $0x10] sm:$0xff]  ;;  %v96_v6 = vld [vmem:[#allocation2 + $0x18] sm:$0xff]  ;;  %v523_v10 = vmov 1   ;;  %v524_v16 = vmov 2   ;;  %vm525_vm0 = vmmov 0  }
  0x15   :  { %406 = vmatprep.subr.bf16.mxu0 %v522_v1  ;;  %430 = vmatprep.subr.bf16.mxu1 %v522_v1  ;;  %v97_v7 = vld [vmem:[#allocation2 + $0x20] sm:$0xff]  ;;  %v407_v8 = vpack.c.bf16 %v95_v5, %v94_v4  ;;  %v98_v11 = vld [vmem:[#allocation2 + $0x28] sm:$0xff]  ;;  %v99_v12 = vld [vmem:[#allocation2 + $0x30] sm:$0xff]  ;;  %v526_v23 = vmov 0.0   ;;  %s527_s0 = smov [#allocation5]   ;;  %vm277_vm1 = vcmask 64512  }
  0x16   :  { %38 = vperm.xlu0 %464, %v34_v2   ;;  %62 = vperm.xlu1 %466, %v58_v3   ;;  %v410_v9 = vpack.c.bf16 %v97_v7, %v96_v6  ;;  %v413_v13 = vpack.c.bf16 %v99_v12, %v98_v11  ;;  %v100_v14 = vld [vmem:[#allocation2 + $0x38] sm:$0xff]  ;;  %v101_v15 = vld [vmem:[#allocation2 + $0x40] sm:$0xff]  ;;  %v102_v18 = vld [vmem:[#allocation2 + $0x48] sm:$0xff]  ;;  %s285_s1 = sshll.u32 %s527_s0, 4  ;;  %s286_s1 = int_to_ptr.vmem [resolvable:$true] %s285_s1 }
  0x17   :  { %408 = vmatpush3.bf16.msra.mxu0 %v407_v8  ;;  %v416_v17 = vpack.c.bf16 %v101_v15, %v100_v14  ;;  %v103_v19 = vld [vmem:[#allocation2 + $0x50] sm:$0xff]  ;;  %v104_v21 = vld [vmem:[#allocation2 + $0x58] sm:$0xff]  ;;  %v105_v22 = vld [vmem:[#allocation2 + $0x60] sm:$0xff]  ;;  %368 = vmatprep.mubr.msk.f32.mxu0 %vm525_vm0, %v526_v23  ;;  %s492_s2 = scalar_lea.vmem %s286_s1, 128  ;;  %p497_p9 = scmp.lt.s32.totalorder %s286_s1, %s286_s1 }
  0x18   :  { %409 = vmatprep.subr.bf16.mxu0 %v522_v1  ;;  %v419_v20 = vpack.c.bf16 %v103_v19, %v102_v18  ;;  %v186_v24 = vld [vmem:[#allocation2 + $0x88] sm:$0xff]  ;;  %v187_v25 = vld [vmem:[#allocation2 + $0x90] sm:$0xff]  ;;  %v188_v26 = vld [vmem:[#allocation2 + $0x98] sm:$0xff]  ;;  %403 = vmatprep.mubr.msk.f32.mxu1 %vm525_vm0, %v526_v23  ;;  %v422_v29 = vpack.c.bf16 %v105_v22, %v104_v21  ;;  %p493_p8 = scmp.ne.s32.totalorder %s286_s1, %s492_s2  ;;  %p498_p10 = scmp.lt.s32.totalorder %s492_s2, %s492_s2 }
  0x19   :  { %v431_v27 = vpack.c.bf16 %v187_v25, %v186_v24  ;;  %v189_v28 = vld [vmem:[#allocation2 + $0xa0] sm:$0xff]  ;;  %v106_v30 = vld [vmem:[#allocation2 + $0x68] sm:$0xff]  ;;  %v107_v31 = vld [vmem:[#allocation2 + $0x70] sm:$0xff] }
  0x1a   :  { %465 = vset.pattern.permute.xlu0 %v523_v10  ;;  %467 = vset.pattern.permute.xlu1 %v523_v10  ;;  %v434_v32 = vpack.c.bf16 %v189_v28, %v188_v26  ;;  %v190_v33 = vld [vmem:[#allocation2 + $0xa8] sm:$0xff]  ;;  %v191_v34 = vld [vmem:[#allocation2 + $0xb0] sm:$0xff]  ;;  %v425_v35 = vpack.c.bf16 %v107_v31, %v106_v30  ;;  %v108_v36 = vld [vmem:[#allocation2 + $0x78] sm:$0xff]  ;;  %p499_p11 = por %p498_p10, %p497_p9 }
  0x1b   :  { %49 = vperm.xlu0 %465, %v34_v2   ;;  %73 = vperm.xlu1 %467, %v58_v3   ;;  %v109_v37 = vld [vmem:[#allocation2 + $0x80] sm:$0xff]  ;;  %v437_v38 = vpack.c.bf16 %v191_v34, %v190_v33  ;;  %v192_v39 = vld [vmem:[#allocation2 + $0xb8] sm:$0xff]  ;;  %v194_v43 = vld [vmem:[#allocation2 + $0xc8] sm:$0xff] }
  0x1c   :  { %411 = vmatpush3.bf16.msra.mxu0 %v410_v9  ;;  %432 = vmatpush3.bf16.msra.mxu1 %v431_v27  ;;  %v193_v40 = vld [vmem:[#allocation2 + $0xc0] sm:$0xff]  ;;  %v428_v41 = vpack.c.bf16 %v109_v37, %v108_v36  ;;  %v195_v44 = vld [vmem:[#allocation2 + $0xd0] sm:$0xff]  ;;  %v196_v46 = vld [vmem:[#allocation2 + $0xd8] sm:$0xff]  ;;  %p500_p12 = pnand %p499_p11, %p493_p8 }
  0x1d   :  { %412 = vmatprep.subr.bf16.mxu0 %v522_v1  ;;  %433 = vmatprep.subr.bf16.mxu1 %v522_v1  ;;  %v440_v42 = vpack.c.bf16 %v193_v40, %v192_v39  ;;  %v443_v45 = vpack.c.bf16 %v195_v44, %v194_v43  ;;  %v197_v47 = vld [vmem:[#allocation2 + $0xe0] sm:$0xff]  ;;  %v198_v49 = vld [vmem:[#allocation2 + $0xe8] sm:$0xff]  ;;  %v199_v50 = vld [vmem:[#allocation2 + $0xf0] sm:$0xff] }
  0x1e   :  { %v446_v48 = vpack.c.bf16 %v197_v47, %v196_v46  ;;  %v449_v51 = vpack.c.bf16 %v199_v50, %v198_v49  ;;  %v295_v52 = vld [vmem:[#allocation2] ss:$0 sm:$0xff]  ;;  %v294_v56 = vld [vmem:[#allocation2 + $0x108] ss:$0 sm:$0xff]  ;;  %v296_v57 = vld [vmem:[#allocation2 + $0x1] ss:$0 sm:$0xff] }
  0x1f   :  { %468 = vset.pattern.permute.xlu1 %v524_v16  ;;  %469 = vset.pattern.permute.xlu0 %v524_v16  ;;  %v297_v58 = vld [vmem:[#allocation2 + $0x2] ss:$0 sm:$0xff]  ;;  %v298_v63 = vld [vmem:[#allocation2 + $0x3] ss:$0 sm:$0xff]  ;;  %v200_v10 = vld [vmem:[#allocation2 + $0xf8] sm:$0xff] }
  0x20   :  { %84 = vperm.xlu1 %468, %v58_v3   ;;  %414 = vmatpush3.bf16.msra.mxu0 %v413_v13  ;;  %v299_v3 = vld [vmem:[#allocation2 + $0x4] ss:$0 sm:$0xff]  ;;  %v300_v13 = vld [vmem:[#allocation2 + $0x109] ss:$0 sm:$0xff]  ;;  %v301_v18 = vld [vmem:[#allocation2 + $0x10a] ss:$0 sm:$0xff] }
  0x21   :  { %415 = vmatprep.subr.bf16.mxu0 %v522_v1  ;;  %435 = vmatpush3.bf16.msra.mxu1 %v434_v32  ;;  %v201_v11 = vld [vmem:[#allocation2 + $0x100] sm:$0xff] }
  0x22   :  { %436 = vmatprep.subr.bf16.mxu1 %v522_v1  ;;  %v452_v12 = vpack.c.bf16 %v201_v11, %v200_v10 }
  0x24   :  { %417 = vmatpush3.bf16.msra.mxu0 %v416_v17 }
  0x25   :  { %418 = vmatprep.subr.bf16.mxu0 %v522_v1  ;;  %438 = vmatpush3.bf16.msra.mxu1 %v437_v38 }
  0x26   :  { %439 = vmatprep.subr.bf16.mxu1 %v522_v1 }
  0x28   :  { %420 = vmatpush3.bf16.msra.mxu0 %v419_v20 }
  0x29   :  { %421 = vmatprep.subr.bf16.mxu0 %v522_v1  ;;  %441 = vmatpush3.bf16.msra.mxu1 %v440_v42 }
  0x2a   :  { %442 = vmatprep.subr.bf16.mxu1 %v522_v1 }
  0x2c   :  { %423 = vmatpush3.bf16.msra.mxu0 %v422_v29 }
  0x2d   :  { %424 = vmatprep.subr.bf16.mxu0 %v522_v1  ;;  %444 = vmatpush3.bf16.msra.mxu1 %v443_v45 }
  0x2e   :  { %445 = vmatprep.subr.bf16.mxu1 %v522_v1 }
  0x30   :  { %426 = vmatpush3.bf16.msra.mxu0 %v425_v35 }
  0x31   :  { %427 = vmatprep.subr.bf16.mxu0 %v522_v1  ;;  %447 = vmatpush3.bf16.msra.mxu1 %v446_v48 }
  0x32   :  { %448 = vmatprep.subr.bf16.mxu1 %v522_v1 }
  0x34   :  { %429 = vmatpush3.bf16.msra.mxu0 %v428_v41 }
  0x35   :  { %450 = vmatpush3.bf16.msra.mxu1 %v449_v51 }
  0x36   :  { %451 = vmatprep.subr.bf16.mxu1 %v522_v1 }
  0x39   :  { %453 = vmatpush3.bf16.msra.mxu1 %v452_v12 }
  0x95   :  { %v39_v53 = vpop.permute.xlu0 %38  ;;  %v63_v54 = vpop.permute.xlu1 %62 }
  0x96   :  { %v45_v55 = vmul.f32 %v295_v52, %v39_v53  ;;  %v69_v0 = vmul.f32 %v297_v58, %v63_v54 }
  0x98   :  { %v46_v61 = vadd.f32 %v294_v56, %v45_v55 }
  0x9a   :  { %v50_v59 = vpop.permute.xlu0 %49  ;;  %v74_v60 = vpop.permute.xlu1 %73 }
  0x9b   :  { %v56_v62 = vmul.f32 %v296_v57, %v50_v59  ;;  %v80_v5 = vmul.f32 %v298_v63, %v74_v60 }
  0x9d   :  { %v57_v2 = vadd.f32 %v56_v62, %v46_v61 }
  0x9f   :  { %v70_v4 = vadd.f32 %v69_v0, %v57_v2  ;;  %v85_v6 = vpop.permute.xlu1 %84 }
  0xa0   :  { %v91_v7 = vmul.f32 %v299_v3, %v85_v6 }
  0xa1   :  { %v81_v1 = vadd.f32 %v80_v5, %v70_v4 }
  0xa3   :  { %v92_v8 = vadd.f32 %v91_v7, %v81_v1 }
  0xa5   :  { %v93_v9 = vmax.f32 %v92_v8, 0.0 }
  0xa7   :  { %369 = vmatmul.mubr.f32.vlgmr.msra.gmra.mrb[0].mxu0 %v93_v9 }
 0x17a   :  { %v181_v14 = vpop.f32.mrb[0].mxu0 }
 0x17b   :  { %v182_v15 = vadd.f32 %v300_v13, %v181_v14  ;;  %v370_v16 = vpop.f32.mrb[1].mxu0 }
 0x17d   :  { %v185_v17 = vmax.f32 %v182_v15, 0.0 }
 0x17f   :  { %404 = vmatmul.mubr.f32.vlgmr.msra.gmra.mrb[0].mxu1 %v185_v17 }
 0x252   :  { %v273_v19 = vpop.f32.mrb[0].mxu1 }
 0x253   :  { %v274_v20 = vadd.f32 %v301_v18, %v273_v19  ;;  %v405_v21 = vpop.f32.mrb[1].mxu1 }
 0x255   :  { %278 = vst.msk [vmem:[#allocation5] sm:$0xff] %vm277_vm1, %v274_v20 }
 0x256   :  { %503 = shalt.err (!%p500_p12)
}
 0x257   :  { %s504_s5 = scalar_lea.hbm %s597_s3, 128 }
 0x258   :  { %p505_p13 = scmp.ne.s32.totalorder %s597_s3, %s504_s5  ;;  %p508_p0 = scmp.lt.u32.totalorder %s504_s5, %s597_s3 }
 0x25a   :  { %p510_p1 = pnand %p508_p0, %p505_p13 }
 0x25c   :  { %513 = shalt.err (!%p510_p1)
}
 0x25d   :  { %288 = dma.vmem_to_hbm [thread:$0]  %s286_s1, 128, %s597_s3, [#allocation4]  }
 0x25e   :  { %516 = dma.done.wait [#allocation4], 128  }
 0x25f   :  { %517 = vsyncadd [#allocation4], 4294967168 }
 0x260   :  { %292 = vsyncpa [#allocation3], 1 }
 0x261   :  { %293 = vsyncpa [#allocation4], 1 }

</bundles_post_ra>
